<compile_context>
chip_gen: v5e
topology: v5e:2x2
jax: 0.10.0
libtpu: 0.0.40
codegen_flags: <defaults>
</compile_context>

<pallas_src>
import jax
import jax.numpy as jnp
from jax.experimental import pallas as pl
from jax.experimental.pallas import tpu as pltpu


def _round_up(n: int, m: int) -> int:
    return ((n + m - 1) // m) * m


def basic_nn_kernel(x_ref, w1_ref, b1_ref, w2_ref, b2_ref, o_ref):
    # Hidden layer: Linear + ReLU (MXU matmul, f32 accumulation regardless of operand dtype).
    h = jnp.dot(x_ref[...], w1_ref[...], preferred_element_type=jnp.float32)
    h = jnp.maximum(h + b1_ref[...], 0.0)                 # (TB, HP) + (1, HP) broadcast

    # Output layer: Linear + ReLU (output feature dim is unpadded: out_features lanes).
    z = jnp.dot(h.astype(w2_ref.dtype), w2_ref[...], preferred_element_type=jnp.float32)
    z = jnp.maximum(z + b2_ref[...], 0.0)                  # (TB, O) + (1, O) broadcast

    # Numerically stable softmax over the feature axis.
    z_max = jnp.max(z, axis=-1, keepdims=True)
    e = jnp.exp(z - z_max)
    denom = jnp.sum(e, axis=-1, keepdims=True)
    r = pl.reciprocal(denom, approx=True)                  # EUP vrcp (free slot)
    r = r * (2.0 - denom * r)                              # one Newton step -> ~f32 exact
    o_ref[...] = (e * r).astype(o_ref.dtype)


def basic_nn_forward(x, w1, b1, w2, b2, *, mxu_dtype=jnp.bfloat16,
                     max_batch_tile=1024, vmem_limit_bytes=None):
    """BasicNN forward: softmax(relu(relu(x @ w1 + b1) @ w2 + b2), axis=1).

    x: (B, in), w1: (in, hidden), b1: (hidden,), w2: (hidden, out), b2: (out,)
    (weights pre-transposed vs. torch's (out, in) storage so the kernel does x @ W).

    mxu_dtype: bf16 by default — MXU-native on v5e/v6e/v7x, halves the x DMA bytes;
      accumulation stays f32.  Note the hidden activations are also truncated to bf16
      before the second matmul.  Pass jnp.float32 for strict PyTorch f32 parity.
    max_batch_tile / vmem_limit_bytes: per-generation tuning knobs.  v5e/v6e (128 MiB
      VMEM): max_batch_tile up to 2048-4096 and vmem_limit_bytes ~64-100 MiB.  v7x
      (64 MiB VMEM): keep max_batch_tile <= 1024-2048 and the default scoped limit.
    """
    B, in_features = x.shape
    hidden = w1.shape[1]
    out_features = w2.shape[1]

    # Lane-dense padding for the matmul K dims only.  Zero padding is exact: padded x
    # columns hit zero w1 rows; padded hidden units are ReLU(0 + 0) = 0 and hit zero
    # w2 rows.  The OUTPUT feature dim is deliberately left unpadded.
    IP = _round_up(in_features, 128)
    HP = _round_up(hidden, 128)

    # Pad + cast x in one fused wrapper op.  Batch axis is NOT padded (ragged last block).
    x_p = jnp.pad(x, ((0, 0), (0, IP - in_features))).astype(mxu_dtype)
    w1_p = jnp.pad(w1, ((0, IP - in_features), (0, HP - hidden))).astype(mxu_dtype)
    b1_p = jnp.pad(b1, ((0, HP - hidden),)).reshape(1, HP).astype(jnp.float32)
    w2_p = jnp.pad(w2, ((0, HP - hidden), (0, 0))).astype(mxu_dtype)
    b2_p = b2.reshape(1, out_features).astype(jnp.float32)

    # Batch tile: multiple of 8 sublanes, >= 2 grid steps when B allows it (keeps both
    # v7x TensorCores busy on the "parallel" axis), capped by max_batch_tile for VMEM.
    TB = max(8, min(int(max_batch_tile), _round_up(pl.cdiv(B, 2), 8)))
    grid = (pl.cdiv(B, TB),)

    itemsize = jnp.dtype(mxu_dtype).itemsize
    cost = pl.CostEstimate(
        flops=2 * B * (IP * HP + HP * out_features),
        transcendentals=B * (out_features + 1),
        bytes_accessed=(B * IP * itemsize                      # x stream
                        + B * out_features * 4                 # output stream
                        + (IP * HP + HP * out_features) * itemsize
                        + (HP + out_features) * 4),
    )

    out = pl.pallas_call(
        basic_nn_kernel,
        out_shape=jax.ShapeDtypeStruct((B, out_features), jnp.float32),
        grid_spec=pltpu.PrefetchScalarGridSpec(
            num_scalar_prefetch=0,
            grid=grid,
            in_specs=[
                pl.BlockSpec((TB, IP), lambda i: (i, 0)),             # x: streamed over batch
                pl.BlockSpec((IP, HP), lambda i: (0, 0)),             # w1: resident
                pl.BlockSpec((1, HP), lambda i: (0, 0)),              # b1: resident
                pl.BlockSpec((HP, out_features), lambda i: (0, 0)),   # w2: resident
                pl.BlockSpec((1, out_features), lambda i: (0, 0)),    # b2: resident
            ],
            out_specs=pl.BlockSpec((TB, out_features), lambda i: (i, 0)),
        ),
        compiler_params=pltpu.CompilerParams(
            dimension_semantics=("parallel",),      # shard batch tiles across TCs (v7x)
            vmem_limit_bytes=vmem_limit_bytes,      # None -> compiler default (safe on v7x)
        ),
        cost_estimate=cost,
    )(x_p, w1_p, b1_p, w2_p, b2_p)

    return out


def reference_forward(x, w1, b1, w2, b2):
    h = jnp.maximum(x @ w1 + b1, 0.0)
    z = jnp.maximum(h @ w2 + b2, 0.0)
    return jax.nn.softmax(z, axis=1)


if __name__ == "__main__":
    # Small shapes consistent with the module; batch=10 exercises the ragged last block
    # (TB=8 -> 2 grid steps, second block only half real).
    batch, in_features, hidden_features, out_features = 10, 32, 64, 16

    key = jax.random.PRNGKey(0)
    kx, kw1, kb1, kw2, kb2 = jax.random.split(key, 5)

    x = jax.random.normal(kx, (batch, in_features), dtype=jnp.float32)

    # Deterministic init mimicking nn.Linear's uniform(-1/sqrt(fan_in), 1/sqrt(fan_in)).
    # PyTorch stores weight as (out, in); we build the transposed (in, out) matrices.
    lim1 = 1.0 / (in_features ** 0.5)
    lim2 = 1.0 / (hidden_features ** 0.5)
    w1 = jax.random.uniform(kw1, (in_features, hidden_features), jnp.float32, -lim1, lim1)
    b1 = jax.random.uniform(kb1, (hidden_features,), jnp.float32, -lim1, lim1)
    w2 = jax.random.uniform(kw2, (hidden_features, out_features), jnp.float32, -lim2, lim2)
    b2 = jax.random.uniform(kb2, (out_features,), jnp.float32, -lim2, lim2)

    ref = reference_forward(x, w1, b1, w2, b2)

    # f32 parity mode: matches PyTorch f32 semantics (tight tolerance).
    out_f32 = jax.block_until_ready(
        basic_nn_forward(x, w1, b1, w2, b2, mxu_dtype=jnp.float32))
    assert out_f32.shape == (batch, out_features)
    assert jnp.allclose(out_f32, ref, atol=2e-5, rtol=2e-5), "f32 mode mismatch vs reference"
    assert jnp.allclose(jnp.sum(out_f32, axis=1), 1.0, atol=2e-5)

    # Default bf16-operand mode (f32 accumulate): looser tolerance.
    out_bf16 = jax.block_until_ready(basic_nn_forward(x, w1, b1, w2, b2))
    assert out_bf16.shape == (batch, out_features)
    assert jnp.allclose(out_bf16, ref, atol=2e-2, rtol=2e-2), "bf16 mode mismatch vs reference"
    assert jnp.allclose(jnp.sum(out_bf16, axis=1), 1.0, atol=2e-3)

    print("KERNEL_OK")
</pallas_src>

<mosaic_0001>
module attributes {stable_mosaic.version = 11 : i64} {
  func.func @basic_nn_kernel(%arg0: i32, %arg1: memref<8x128xf32, #tpu.memory_space<vmem>>, %arg2: memref<128x128xf32, #tpu.memory_space<vmem>>, %arg3: memref<1x128xf32, #tpu.memory_space<vmem>>, %arg4: memref<128x16xf32, #tpu.memory_space<vmem>>, %arg5: memref<1x16xf32, #tpu.memory_space<vmem>>, %arg6: memref<8x16xf32, #tpu.memory_space<vmem>>) attributes {dimension_semantics = [#tpu.dimension_semantics<parallel>], iteration_bounds = array<i64: 2>, scalar_prefetch = 0 : i64, scratch_operands = 0 : i64, tpu.core_type = #tpu.core_type<tc>, window_params = [{transform_indices = @transform_0, window_bounds = array<i64: 8, 128>}, {pipeline_mode = #tpu.pipeline_mode<synchronous>, transform_indices = @transform_1, window_bounds = array<i64: 128, 128>}, {pipeline_mode = #tpu.pipeline_mode<synchronous>, transform_indices = @transform_2, window_bounds = array<i64: 1, 128>}, {pipeline_mode = #tpu.pipeline_mode<synchronous>, transform_indices = @transform_3, window_bounds = array<i64: 128, 16>}, {pipeline_mode = #tpu.pipeline_mode<synchronous>, transform_indices = @transform_4, window_bounds = array<i64: 1, 16>}, {transform_indices = @transform_5, window_bounds = array<i64: 8, 16>}]} {
    %c0 = arith.constant 0 : index
    %c0_0 = arith.constant 0 : index
    %0 = vector.load %arg1[%c0, %c0_0] : memref<8x128xf32, #tpu.memory_space<vmem>>, vector<8x128xf32>
    %c0_1 = arith.constant 0 : index
    %c0_2 = arith.constant 0 : index
    %1 = vector.load %arg2[%c0_1, %c0_2] : memref<128x128xf32, #tpu.memory_space<vmem>>, vector<128x128xf32>
    %cst = arith.constant dense<0.000000e+00> : vector<8x128xf32>
    %2 = tpu.matmul %0, %1, %cst {dimension_numbers = #tpu.dot_dimension_numbers<[1], [0], [0], [1], [0, 0, 1, 1], [], []>} : vector<8x128xf32>, vector<128x128xf32>, vector<8x128xf32> -> vector<8x128xf32>
    %c0_3 = arith.constant 0 : index
    %c0_4 = arith.constant 0 : index
    %3 = vector.load %arg3[%c0_3, %c0_4] : memref<1x128xf32, #tpu.memory_space<vmem>>, vector<1x128xf32>
    %4 = vector.broadcast %3 : vector<1x128xf32> to vector<8x128xf32>
    %5 = arith.addf %2, %4 : vector<8x128xf32>
    %cst_5 = arith.constant 0.000000e+00 : f32
    %6 = vector.broadcast %cst_5 : f32 to vector<8x128xf32>
    %7 = arith.maximumf %5, %6 : vector<8x128xf32>
    %c0_6 = arith.constant 0 : index
    %c0_7 = arith.constant 0 : index
    %8 = vector.load %arg4[%c0_6, %c0_7] : memref<128x16xf32, #tpu.memory_space<vmem>>, vector<128x16xf32>
    %cst_8 = arith.constant dense<0.000000e+00> : vector<8x16xf32>
    %9 = tpu.matmul %7, %8, %cst_8 {dimension_numbers = #tpu.dot_dimension_numbers<[1], [0], [0], [1], [0, 0, 1, 1], [], []>} : vector<8x128xf32>, vector<128x16xf32>, vector<8x16xf32> -> vector<8x16xf32>
    %c0_9 = arith.constant 0 : index
    %c0_10 = arith.constant 0 : index
    %10 = vector.load %arg5[%c0_9, %c0_10] : memref<1x16xf32, #tpu.memory_space<vmem>>, vector<1x16xf32>
    %11 = vector.broadcast %10 : vector<1x16xf32> to vector<8x16xf32>
    %12 = arith.addf %9, %11 : vector<8x16xf32>
    %cst_11 = arith.constant 0.000000e+00 : f32
    %13 = vector.broadcast %cst_11 : f32 to vector<8x16xf32>
    %14 = arith.maximumf %12, %13 : vector<8x16xf32>
    %cst_12 = arith.constant dense<0xFF800000> : vector<8xf32>
    %15 = vector.multi_reduction <maximumf>, %14, %cst_12 [1] : vector<8x16xf32> to vector<8xf32>
    %16 = vector.shape_cast %15 : vector<8xf32> to vector<8x1xf32>
    %17 = vector.broadcast %16 : vector<8x1xf32> to vector<8x16xf32>
    %18 = arith.subf %14, %17 : vector<8x16xf32>
    %19 = math.exp %18 : vector<8x16xf32>
    %cst_13 = arith.constant dense<0.000000e+00> : vector<8xf32>
    %20 = vector.multi_reduction <add>, %19, %cst_13 [1] : vector<8x16xf32> to vector<8xf32>
    %21 = vector.shape_cast %20 : vector<8xf32> to vector<8x1xf32>
    %22 = tpu.reciprocal %21 {approx = true} : vector<8x1xf32> -> vector<8x1xf32>
    %23 = arith.mulf %21, %22 : vector<8x1xf32>
    %cst_14 = arith.constant 2.000000e+00 : f32
    %24 = vector.broadcast %cst_14 : f32 to vector<8x1xf32>
    %25 = arith.subf %24, %23 : vector<8x1xf32>
    %26 = arith.mulf %22, %25 : vector<8x1xf32>
    %27 = vector.broadcast %26 : vector<8x1xf32> to vector<8x16xf32>
    %28 = arith.mulf %19, %27 : vector<8x16xf32>
    %c0_15 = arith.constant 0 : index
    %c0_16 = arith.constant 0 : index
    %29 = vector.load %arg6[%c0_15, %c0_16] : memref<8x16xf32, #tpu.memory_space<vmem>>, vector<8x16xf32>
    tpu.vector_store %arg6[%c0_15, %c0_16], %28 {strides = array<i32>} : memref<8x16xf32, #tpu.memory_space<vmem>>, vector<8x16xf32>,
    return
  }
  func.func @transform_0(%arg0: i32) -> (i32, i32) {
    %c0_i32 = arith.constant 0 : i32
    %c0_i32_0 = arith.constant 0 : i32
    return %arg0, %c0_i32 : i32, i32
  }
  func.func @transform_1(%arg0: i32) -> (i32, i32) {
    %c0_i32 = arith.constant 0 : i32
    %c0_i32_0 = arith.constant 0 : i32
    %c0_i32_1 = arith.constant 0 : i32
    return %c0_i32, %c0_i32_0 : i32, i32
  }
  func.func @transform_2(%arg0: i32) -> (i32, i32) {
    %c0_i32 = arith.constant 0 : i32
    %c0_i32_0 = arith.constant 0 : i32
    %c0_i32_1 = arith.constant 0 : i32
    return %c0_i32, %c0_i32_0 : i32, i32
  }
  func.func @transform_3(%arg0: i32) -> (i32, i32) {
    %c0_i32 = arith.constant 0 : i32
    %c0_i32_0 = arith.constant 0 : i32
    %c0_i32_1 = arith.constant 0 : i32
    return %c0_i32, %c0_i32_0 : i32, i32
  }
  func.func @transform_4(%arg0: i32) -> (i32, i32) {
    %c0_i32 = arith.constant 0 : i32
    %c0_i32_0 = arith.constant 0 : i32
    %c0_i32_1 = arith.constant 0 : i32
    return %c0_i32, %c0_i32_0 : i32, i32
  }
  func.func @transform_5(%arg0: i32) -> (i32, i32) {
    %c0_i32 = arith.constant 0 : i32
    %c0_i32_0 = arith.constant 0 : i32
    return %arg0, %c0_i32 : i32, i32
  }
}

</mosaic_0001>

<bundles_post_ra>
// kernel: tpu_custom_call.1
= control target key start
LH: loop header
LB: loop body
LE: loop exit
PB: predicated region body
PF: predicated region fallthrough
CT: control target
= control target key end

     0   :  { %10 = vsyncpa [#allocation3], 0  ;;  %s733_s0 = inlined_call_operand.vmem [shape: f32[10,128], index: 0, kind: input, shape index: {}]   ;;  %s734_s1 = inlined_call_operand.vmem [shape: f32[128,128], index: 1, kind: input, shape index: {}]   ;;  %s735_s2 = inlined_call_operand.vmem [shape: f32[1,128], index: 2, kind: input, shape index: {}]   ;;  %s736_s3 = inlined_call_operand.vmem [shape: f32[128,16], index: 3, kind: input, shape index: {}]   ;;  %s737_s4 = inlined_call_operand.vmem [shape: f32[1,16], index: 4, kind: input, shape index: {}]   ;;  %s738_s5 = inlined_call_operand.hbm [shape: f32[10,16], index: 5, kind: output, shape index: {}]  }
   0x1   :  { %12 = vsyncpa [#allocation3 + $0x1], 0  ;;  %s543_s18 = smov 0   ;;  %s545_s19 = smov 0  }
   0x2   :  { %s547_s20 = smov 0   ;;  %s549_s21 = smov 0  }
   0x3 LB: > { %s564_s22 = sadd.s32 4294967295, %s511_s21   ;;  %s394_s23 = sadd.s32 4294967294, %s511_s21   ;;  %s511_s21 = sphi %s549_s21, %s744_s21   ;;  %s507_s20 = sphi %s547_s20, %s743_s20   ;;  %s503_s19 = sphi %s545_s19, %s742_s19   ;;  %s499_s18 = sphi %s543_s18, %s741_s18  }
   0x4   : > { %s568_s24 = sadd.s32 1, %s511_s21   ;;  %s135_s25 = sadd.s32 1, %s507_s20 }
   0x5   : > { %s132_s26 = ssub.s32 %s511_s21, %s568_s24  ;;  %p145_p0 = scmp.ne.s32.totalorder %s507_s20, %s503_s19 }
   0x6   : > { %p133_p1 = scmp.eq.s32.totalorder %s132_s26, 0  ;;  %p146_p2 = scmp.eq.s32.totalorder %s564_s22, 1 }
   0x7   : > { %p151_p3 = scmp.ne.s32.totalorder %s503_s19, %s499_s18  ;;  %p152_p4 = scmp.eq.s32.totalorder %s394_s23, 1 }
   0x8   : > { %s579_s27 = scalar_select %p133_p1, %s507_s20, %s135_s25  }
   0x9   : > { %p581_p5 = por %p146_p2, %p145_p0  ;;  %p585_p6 = por %p152_p4, %p151_p3 }
   0xa   : > { %p397_p7 = scmp.ge.s32.totalorder %s511_s21, 1  ;;  %p189_p8 = scmp.lt.s32.totalorder %s511_s21, 3 }
   0xc   : > { %p190_p9 = pnand %p397_p7, %p189_p8 }
   0xd   : > { %p216_p10 = scmp.lt.s32.totalorder (!%p190_p9), %s564_s22, 1  ;;  %s401_s16 = sshll.u32 (!%p190_p9), %s564_s22, 3 }
   0xe   : > { %193 = sbr.rel (%p190_p9) target bundleno = 574 (0x23e), region = 40  ;;  %s330_s25 = scalar_lea.hbm (!%p190_p9), %s738_s5, %s401_s16 }
   0xf   : > { %s469_s12 = scalar_lea.hbm (!%p190_p9), %s738_s5, 16 }
  0x13   : > { %v236_v0 = vld [vmem:[%s734_s1 + $0x78] sm:$0xff]  ;;  %v235_v1 = vld [vmem:[%s734_s1 + $0x70] sm:$0xff]  ;;  %v234_v2 = vld [vmem:[%s734_s1 + $0x68] sm:$0xff]  ;;  %s217_s11 = scalar_select %p216_p10, %s564_s22, 1  ;;  %vm303_vm0 = vcmask 130048  }
  0x14   : > { %241 = vmatpush.msra.mxu0 %v236_v0  ;;  %v233_v3 = vld [vmem:[%s734_s1 + $0x60] sm:$0xff]  ;;  %v277_v4 = vld [vmem:[%s736_s3 + $0x78] sm:$0xff]  ;;  %v276_v5 = vld [vmem:[%s736_s3 + $0x70] sm:$0xff] }
  0x15   : > { %v232_v6 = vld [vmem:[%s734_s1 + $0x58] sm:$0xff]  ;;  %282 = vmatpush.msra.mxu1 %v277_v4  ;;  %v275_v7 = vld [vmem:[%s736_s3 + $0x68] sm:$0xff]  ;;  %v231_v8 = vld [vmem:[%s734_s1 + $0x50] sm:$0xff]  ;;  %s399_s26 = sshll.u32 %s217_s11, 3  ;;  %s213_s11 = sand.u32 1, %s503_s19  }
  0x16   : > { %242 = vmatpush.msra.mxu0 %v235_v1  ;;  %v274_v9 = vld [vmem:[%s736_s3 + $0x60] sm:$0xff]  ;;  %v230_v10 = vld [vmem:[%s734_s1 + $0x48] sm:$0xff]  ;;  %v273_v11 = vld [vmem:[%s736_s3 + $0x58] sm:$0xff]  ;;  %s219_s15 = scalar_lea.vmem %s733_s0, %s399_s26  ;;  %s334_s26 = sshll.u32 %s330_s25, 4  ;;  %s335_s26 = int_to_ptr.hbm [resolvable:$true] %s334_s26 }
  0x17   : > { %283 = vmatpush.msra.mxu1 %v276_v5  ;;  %v229_v12 = vld [vmem:[%s734_s1 + $0x40] sm:$0xff]  ;;  %v272_v13 = vld [vmem:[%s736_s3 + $0x50] sm:$0xff]  ;;  %v228_v14 = vld [vmem:[%s734_s1 + $0x38] sm:$0xff]  ;;  %s320_s7 = scalar_lea.sflag [#allocation3], %s213_s11  ;;  %s463_s8 = sshra.s32 %s335_s26, 4  ;;  %s464_s8 = int_to_ptr.hbm [resolvable:$true] %s463_s8 }
  0x18   : > { %243 = vmatpush.msra.mxu0 %v234_v2  ;;  %v271_v15 = vld [vmem:[%s736_s3 + $0x48] sm:$0xff]  ;;  %v227_v16 = vld [vmem:[%s734_s1 + $0x30] sm:$0xff]  ;;  %v270_v17 = vld [vmem:[%s736_s3 + $0x40] sm:$0xff]  ;;  %s465_s22 = scalar_lea.hbm %s464_s8, 8  ;;  %p470_p0 = scmp.lt.s32.totalorder %s464_s8, %s738_s5 }
  0x19   : > { %284 = vmatpush.msra.mxu1 %v275_v7  ;;  %v226_v18 = vld [vmem:[%s734_s1 + $0x28] sm:$0xff]  ;;  %v269_v19 = vld [vmem:[%s736_s3 + $0x38] sm:$0xff]  ;;  %v225_v20 = vld [vmem:[%s734_s1 + $0x20] sm:$0xff]  ;;  %p466_p11 = scmp.ne.s32.totalorder %s464_s8, %s465_s22  ;;  %p471_p1 = scmp.lt.s32.totalorder %s469_s12, %s465_s22 }
  0x1a   : > { %244 = vmatpush.msra.mxu0 %v233_v3  ;;  %v268_v21 = vld [vmem:[%s736_s3 + $0x30] sm:$0xff]  ;;  %v224_v22 = vld [vmem:[%s734_s1 + $0x18] sm:$0xff]  ;;  %v267_v23 = vld [vmem:[%s736_s3 + $0x28] sm:$0xff] }
  0x1b   : > { %285 = vmatpush.msra.mxu1 %v274_v9  ;;  %v223_v24 = vld [vmem:[%s734_s1 + $0x10] sm:$0xff]  ;;  %v266_v25 = vld [vmem:[%s736_s3 + $0x20] sm:$0xff]  ;;  %v222_v26 = vld [vmem:[%s734_s1 + $0x8] sm:$0xff]  ;;  %p467_p12 = pnand %p466_p11, %p581_p5  ;;  %p472_p2 = por %p471_p1, %p470_p0 }
  0x1c   : > { %245 = vmatpush.msra.mxu0 %v232_v6  ;;  %v265_v27 = vld [vmem:[%s736_s3 + $0x18] sm:$0xff]  ;;  %v221_v28 = vld [vmem:[%s734_s1] sm:$0xff]  ;;  %v264_v30 = vld [vmem:[%s736_s3 + $0x10] sm:$0xff] }
  0x1d   : > { %286 = vmatpush.msra.mxu1 %v273_v11  ;;  %v220_v29 = vld [vmem:[%s219_s15] sm:$0xff]  ;;  %v263_v31 = vld [vmem:[%s736_s3 + $0x8] sm:$0xff]  ;;  %s398_s15 = sshll.u32 %s213_s11, 3  ;;  %p468_p13 = pneg %p467_p12 }
  0x1e   : > { %246 = vmatpush.msra.mxu0 %v231_v8  ;;  %v262_v32 = vld [vmem:[%s736_s3] sm:$0xff]  ;;  %s215_s30 = scalar_lea.vmem [#allocation2], %s398_s15 }
  0x1f   : > { %287 = vmatpush.msra.mxu1 %v272_v13  ;;  %v443_v33 = vld [vmem:[%s735_s2] ss:$0 sm:$0xff]  ;;  %s332_s6 = sshll.u32 %s215_s30, 4  ;;  %p473_p3 = pnand %p472_p2, %p468_p13  ;;  %s333_s6 = int_to_ptr.vmem [resolvable:$true] %s332_s6 }
  0x20   : > { %247 = vmatpush.msra.mxu0 %v230_v10  ;;  %v444_v37 = vld [vmem:[%s737_s4] ss:$0 sm:$0xff] }
  0x21   : > { %288 = vmatpush.msra.mxu1 %v271_v15 }
  0x22   : > { %248 = vmatpush.msra.mxu0 %v229_v12 }
  0x23   : > { %289 = vmatpush.msra.mxu1 %v270_v17 }
  0x24   : > { %249 = vmatpush.msra.mxu0 %v228_v14 }
  0x25   : > { %290 = vmatpush.msra.mxu1 %v269_v19 }
  0x26   : > { %250 = vmatpush.msra.mxu0 %v227_v16 }
  0x27   : > { %291 = vmatpush.msra.mxu1 %v268_v21 }
  0x28   : > { %251 = vmatpush.msra.mxu0 %v226_v18 }
  0x29   : > { %292 = vmatpush.msra.mxu1 %v267_v23 }
  0x2a   : > { %252 = vmatpush.msra.mxu0 %v225_v20 }
  0x2b   : > { %293 = vmatpush.msra.mxu1 %v266_v25 }
  0x2c   : > { %253 = vmatpush.msra.mxu0 %v224_v22 }
  0x2d   : > { %294 = vmatpush.msra.mxu1 %v265_v27 }
  0x2e   : > { %254 = vmatpush.msra.mxu0 %v223_v24 }
  0x2f   : > { %295 = vmatpush.msra.mxu1 %v264_v30 }
  0x30   : > { %255 = vmatpush.msra.mxu0 %v222_v26 }
  0x31   : > { %296 = vmatpush.msra.mxu1 %v263_v31 }
  0x32   : > { %256 = vmatpush.msra.mxu0 %v221_v28 }
  0x33   : > { %257 = vmatmul.f32.vlgmr.msra.gmra.mxu0 %v220_v29  ;;  %297 = vmatpush.msra.mxu1 %v262_v32 }
  0xb0   : > { %v258_v34 = vpop.f32.mrf.mxu0 }
  0xb1   : > { %v259_v35 = vadd.f32 %v443_v33, %v258_v34 }
  0xb3   : > { %v261_v36 = vmax.f32 %v259_v35, 0.0 }
  0xb5   : > { %298 = vmatmul.f32.vlgmr.msra.gmra.mxu1 %v261_v36 }
 0x132   : > { %v299_v38 = vpop.f32.mrf.mxu1 }
 0x133   : > { %v300_v39 = vadd.f32 %v444_v37, %v299_v38 }
 0x135   : > { %v302_v40 = vmax.f32 %v300_v39, 0.0 }
 0x137   : > { %v304_v41 = vsel %vm303_vm0, %v302_v40, -inf }
 0x138   : > { %305 = vmax.xlane.f32.xlu0 %v304_v41 }
 0x1ab   : > { %v306_v42 = vpop.xlane.xlu0 %305 }
 0x1ac   : > { %v307_v43 = vsub.f32 %v302_v40, %v306_v42 }
 0x1ae   : > { %v308_v44 = vmul.f32 1.442695, %v307_v43 }
 0x1b0   : > { %445 = vpow2.f32 %v308_v44 }
 0x1b6   : > { %v446_v45 = vpop.eup %445 }
 0x1b7   : > { %v310_v46 = vsel %vm303_vm0, %v446_v45, 0.0 }
 0x1b8   : > { %311 = vadd.xlane.f32.xlu0 %v310_v46 }
 0x22b   : > { %v312_v47 = vpop.xlane.xlu0 %311 }
 0x22c   : > { %447 = vrcp.f32 %v312_v47 }
 0x232   : > { %v448_v48 = vpop.eup %447 }
 0x233   : > { %v314_v49 = vmul.f32 %v448_v48, %v312_v47 }
 0x235   : > { %v315_v50 = vsub.f32 2.0, %v314_v49 }
 0x237   : > { %v316_v51 = vmul.f32 %v448_v48, %v315_v50 }
 0x239   : > { %v317_v52 = vmul.f32 %v446_v45, %v316_v51 }
 0x23b   : > { %318 = vst.msk [vmem:[%s215_s30] sm:$0xff] %vm303_vm0, %v317_v52 }
 0x23c   : > { %476 = shalt.err (!%p473_p3)
}
 0x23d   : > { %404 = dma.vmem_to_hbm [thread:$0]  (%p581_p5), %s333_s6, 128, %s335_s26, %s320_s7  }
 0x23e PF: > { %p410_p4 = scmp.ge.s32.totalorder %s511_s21, 2  ;;  %s346_s11 = sand.u32 1, %s499_s18  }
 0x23f   : > { %s347_s15 = scalar_lea.sflag [#allocation3], %s346_s11 }
 0x240   : > { %p407_p7 = pnand %p410_p4, %p585_p6 }
 0x242   : > { %p408_p8 = pneg %p407_p7 }
 0x244   : > { %494 = dma.done.wait (%p408_p8), %s347_s15, 128  }
 0x245   : > { %496 = vsyncadd (%p408_p8), %s347_s15, 4294967168  ;;  %p15_p9 = scmp.ge.s32.totalorder %s568_s24, 4   ;;  %s741_s18 = smov %s503_s19 }
 0x246   : > { %s742_s19 = smov %s507_s20  ;;  %s743_s20 = smov %s579_s27 }
 0x247   : > { %s744_s21 = smov %s568_s24  ;;  %17 = sbr.rel (!%p15_p9) target bundleno = 3 (0x3), region = 75 }
 0x24c   :  { %353 = vsyncpa [#allocation3], 1 }
 0x24d   :  { %355 = vsyncpa [#allocation3 + $0x1], 1 }

</bundles_post_ra>
